<compile_context>
chip_gen: v5e
topology: v5e:2x2
jax: 0.10.0
libtpu: 0.0.40
codegen_flags: <defaults>
</compile_context>

<pallas_src>
import functools

import jax
import jax.numpy as jnp
import numpy as np
from jax.experimental import pallas as pl
from jax.experimental.pallas import tpu as pltpu

_P = 8            # pixel sub-streams packed on the channel/sublane axis (= vreg sublanes)
_COL_TILE = 2048  # lane columns per grid step -> _P * _COL_TILE = 16K pixels/step
_CHN_MID = 32
_NEG_SLOPE = 0.2
_NUM_FEAT = 6     # d0, d1, d0-d1, d0/(d1+eps), d1/(d0+eps), const-1 (folds bias1)


def _round_up(x, m):
    return (x + m - 1) // m * m


# ---------------------------------------------------------------------------
# Fused kernel.  Pixel blocks are (8, TB): sublane p = pixel group p.
# Packed features g: row k*8+p = feature k of the pixel in sublane-group p,
# so the P-way block-structured weights (built offline) keep every matmul
# channel-dense:  (256,48)@(48,TB) -> (256,256)@(256,TB) -> (8,256)@(256,TB).
# ---------------------------------------------------------------------------
def _dist2logit_kernel(d0_ref, d1_ref, w1_ref, w2_ref, b2_ref, w3_ref, b3_ref,
                       o_ref, *, eps, slope):
    a = d0_ref[...]                                   # (8, TB) f32
    b = d1_ref[...]                                   # (8, TB) f32
    rb = pl.reciprocal(b + eps, approx=True)          # EUP, not a VALU divide
    ra = pl.reciprocal(a + eps, approx=True)
    ones = jnp.ones_like(a)
    g = jnp.concatenate([a, b, a - b, a * rb, b * ra, ones], axis=0)  # (48, TB)

    dot = functools.partial(jnp.dot, preferred_element_type=jnp.float32)

    h = dot(w1_ref[...], g.astype(jnp.bfloat16))                  # (256, TB); b1 folded in
    h = jnp.maximum(h, slope * h)                                 # LeakyReLU(0.2)
    h = dot(w2_ref[...], h.astype(jnp.bfloat16)) + b2_ref[...]    # (256, TB)
    h = jnp.maximum(h, slope * h)
    h = dot(w3_ref[...], h.astype(jnp.bfloat16)) + b3_ref[...]    # (8, TB)
    o_ref[...] = pl.reciprocal(1.0 + jnp.exp(-h), approx=True)    # Sigmoid


# ---------------------------------------------------------------------------
# Parameters
# ---------------------------------------------------------------------------
def init_params(key, chn_mid=_CHN_MID):
    """Conv-style params: w (Cout, Cin) = Conv2d.weight[:, :, 0, 0], b (Cout,)."""
    k1, k2, k3, k4, k5, k6 = jax.random.split(key, 6)
    w1 = jax.random.normal(k1, (chn_mid, 5), jnp.float32) / np.sqrt(5.0)
    b1 = 0.1 * jax.random.normal(k2, (chn_mid,), jnp.float32)
    w2 = jax.random.normal(k3, (chn_mid, chn_mid), jnp.float32) / np.sqrt(chn_mid)
    b2 = 0.1 * jax.random.normal(k4, (chn_mid,), jnp.float32)
    w3 = jax.random.normal(k5, (1, chn_mid), jnp.float32) / np.sqrt(chn_mid)
    b3 = 0.1 * jax.random.normal(k6, (1,), jnp.float32)
    return (w1, b1, w2, b2, w3, b3)


def prepare_params(params, p=_P):
    """One-time layout transform (never per forward call):
       * fold layer-1 bias into W1 via a constant-1 input feature,
       * expand all weights to P-way block-structured form matching the
         (8, cols) sublane-packed pixel layout,
       * cast weights to bf16 for single-pass MXU matmuls (biases stay f32)."""
    w1, b1, w2, b2, w3, b3 = (np.asarray(t, np.float32) for t in params)
    cm = w1.shape[0]
    w1a = np.concatenate([w1, b1.reshape(cm, 1)], axis=1)          # (32, 6)
    nf = w1a.shape[1]
    assert nf == _NUM_FEAT
    w1_big = np.zeros((p * cm, nf * p), np.float32)                # (256, 48)
    w2_big = np.zeros((p * cm, p * cm), np.float32)                # (256, 256)
    w3_big = np.zeros((p, p * cm), np.float32)                     # (8, 256)
    for q in range(p):
        for k in range(nf):
            w1_big[q * cm:(q + 1) * cm, k * p + q] = w1a[:, k]
        w2_big[q * cm:(q + 1) * cm, q * cm:(q + 1) * cm] = w2
        w3_big[q, q * cm:(q + 1) * cm] = w3[0]
    b2_big = np.tile(b2.reshape(cm, 1), (p, 1))                    # (256, 1)
    b3_big = np.full((p, 1), float(b3[0]), np.float32)             # (8, 1)
    return (jnp.asarray(w1_big, jnp.bfloat16),
            jnp.asarray(w2_big, jnp.bfloat16),
            jnp.asarray(b2_big, jnp.float32),
            jnp.asarray(w3_big, jnp.bfloat16),
            jnp.asarray(b3_big, jnp.float32))


# ---------------------------------------------------------------------------
# Forward
# ---------------------------------------------------------------------------
def dist2logit_forward(d0, d1, kparams, eps=0.1):
    """d0, d1: (N, 1, H, W).  Returns (N, 1, H, W) values in [0, 1]."""
    w1k, w2k, b2k, w3k, b3k = kparams
    n, c, h, w = d0.shape
    assert c == 1 and d1.shape == d0.shape
    p = w3k.shape[0]                                  # = _P

    m = n * h * w
    cols = max(pl.cdiv(m, p), 1)
    # Lane-dense column tile; aim for >=2 grid steps (v7x megacore sharding)
    # while keeping ~16K pixels/step to amortize per-step pipeline overhead.
    tb = min(_COL_TILE, _round_up(max(pl.cdiv(cols, 2), 1), 128))
    cols_pad = _round_up(cols, tb)
    mp = p * cols_pad

    d0f = jnp.pad(d0.reshape(-1).astype(jnp.float32), (0, mp - m)).reshape(p, cols_pad)
    d1f = jnp.pad(d1.reshape(-1).astype(jnp.float32), (0, mp - m)).reshape(p, cols_pad)

    pix_spec = pl.BlockSpec((p, tb), lambda i: (0, i))
    full = lambda arr: pl.BlockSpec(arr.shape, lambda i: (0, 0))

    flops = cols_pad * 2 * (w1k.shape[0] * w1k.shape[1]
                            + w2k.shape[0] * w2k.shape[1]
                            + w3k.shape[0] * w3k.shape[1]) + 24 * mp
    bytes_accessed = 3 * mp * 4 + sum(int(np.prod(t.shape)) * t.dtype.itemsize
                                      for t in kparams)

    out = pl.pallas_call(
        functools.partial(_dist2logit_kernel, eps=float(eps), slope=_NEG_SLOPE),
        out_shape=jax.ShapeDtypeStruct((p, cols_pad), jnp.float32),
        grid=(cols_pad // tb,),
        in_specs=[pix_spec, pix_spec,
                  full(w1k), full(w2k), full(b2k), full(w3k), full(b3k)],
        out_specs=pix_spec,
        compiler_params=pltpu.CompilerParams(
            dimension_semantics=("parallel",),        # megacore sharding on v7x
            vmem_limit_bytes=32 * 1024 * 1024,        # safe on v5e/v6e/v7x
        ),
        cost_estimate=pl.CostEstimate(
            flops=int(flops),
            transcendentals=int(4 * mp),
            bytes_accessed=int(bytes_accessed)),
    )(d0f, d1f, w1k, w2k, b2k, w3k, b3k)

    return out.reshape(-1)[:m].reshape(n, 1, h, w)


# ---------------------------------------------------------------------------
# Pure-JAX reference (mirrors the PyTorch module exactly, f32 throughout)
# ---------------------------------------------------------------------------
def dist2logit_reference(d0, d1, params, eps=0.1):
    w1, b1, w2, b2, w3, b3 = params
    x = jnp.concatenate(
        [d0, d1, d0 - d1, d0 / (d1 + eps), d1 / (d0 + eps)], axis=1)

    def conv1x1(t, wt, bt):
        y = jnp.einsum('nchw,oc->nohw', t, wt,
                       precision=jax.lax.Precision.HIGHEST)
        return y + bt[None, :, None, None]

    hh = conv1x1(x, w1, b1)
    hh = jnp.maximum(hh, _NEG_SLOPE * hh)
    hh = conv1x1(hh, w2, b2)
    hh = jnp.maximum(hh, _NEG_SLOPE * hh)
    hh = conv1x1(hh, w3, b3)
    return 1.0 / (1.0 + jnp.exp(-hh))


if __name__ == "__main__":
    key = jax.random.PRNGKey(0)
    kp, k0, k1 = jax.random.split(key, 3)
    params = init_params(kp)
    kparams = prepare_params(params)    # weight layout prepared once, not per call

    # Two LPIPS-style distance maps: batch=2, 1 channel, 16x16 spatial, >= 0.
    d0 = jax.random.uniform(k0, (2, 1, 16, 16), dtype=jnp.float32)
    d1 = jax.random.uniform(k1, (2, 1, 16, 16), dtype=jnp.float32)

    fwd = jax.jit(dist2logit_forward)
    out = jax.block_until_ready(fwd(d0, d1, kparams))
    assert out.shape == (2, 1, 16, 16)

    ref = dist2logit_reference(d0, d1, params)
    # bf16 single-pass matmuls + approx reciprocals -> loosened tolerance
    # (rating-head semantics: output is a [0,1] score).
    np.testing.assert_allclose(np.asarray(out), np.asarray(ref),
                               rtol=3e-2, atol=3e-2)

    print("KERNEL_OK")
</pallas_src>

<mosaic_0001>
module attributes {stable_mosaic.version = 11 : i64} {
  func.func @_dist2logit_kernel(%arg0: i32, %arg1: memref<8x128xf32, #tpu.memory_space<vmem>>, %arg2: memref<8x128xf32, #tpu.memory_space<vmem>>, %arg3: memref<256x48xbf16, #tpu.memory_space<vmem>>, %arg4: memref<256x256xbf16, #tpu.memory_space<vmem>>, %arg5: memref<256x1xf32, #tpu.memory_space<vmem>>, %arg6: memref<8x256xbf16, #tpu.memory_space<vmem>>, %arg7: memref<8x1xf32, #tpu.memory_space<vmem>>, %arg8: memref<8x128xf32, #tpu.memory_space<vmem>>) attributes {dimension_semantics = [#tpu.dimension_semantics<parallel>], iteration_bounds = array<i64: 1>, scalar_prefetch = 0 : i64, scratch_operands = 0 : i64, tpu.core_type = #tpu.core_type<tc>, window_params = [{transform_indices = @transform_0, window_bounds = array<i64: 8, 128>}, {transform_indices = @transform_1, window_bounds = array<i64: 8, 128>}, {pipeline_mode = #tpu.pipeline_mode<synchronous>, transform_indices = @transform_2, window_bounds = array<i64: 256, 48>}, {pipeline_mode = #tpu.pipeline_mode<synchronous>, transform_indices = @transform_3, window_bounds = array<i64: 256, 256>}, {pipeline_mode = #tpu.pipeline_mode<synchronous>, transform_indices = @transform_4, window_bounds = array<i64: 256, 1>}, {pipeline_mode = #tpu.pipeline_mode<synchronous>, transform_indices = @transform_5, window_bounds = array<i64: 8, 256>}, {pipeline_mode = #tpu.pipeline_mode<synchronous>, transform_indices = @transform_6, window_bounds = array<i64: 8, 1>}, {transform_indices = @transform_7, window_bounds = array<i64: 8, 128>}]} {
    %c0 = arith.constant 0 : index
    %c0_0 = arith.constant 0 : index
    %0 = vector.load %arg1[%c0, %c0_0] : memref<8x128xf32, #tpu.memory_space<vmem>>, vector<8x128xf32>
    %c0_1 = arith.constant 0 : index
    %c0_2 = arith.constant 0 : index
    %1 = vector.load %arg2[%c0_1, %c0_2] : memref<8x128xf32, #tpu.memory_space<vmem>>, vector<8x128xf32>
    %cst = arith.constant 1.000000e-01 : f32
    %2 = vector.broadcast %cst : f32 to vector<8x128xf32>
    %3 = arith.addf %1, %2 : vector<8x128xf32>
    %4 = tpu.reciprocal %3 {approx = true} : vector<8x128xf32> -> vector<8x128xf32>
    %cst_3 = arith.constant 1.000000e-01 : f32
    %5 = vector.broadcast %cst_3 : f32 to vector<8x128xf32>
    %6 = arith.addf %0, %5 : vector<8x128xf32>
    %7 = tpu.reciprocal %6 {approx = true} : vector<8x128xf32> -> vector<8x128xf32>
    %cst_4 = arith.constant 1.000000e+00 : f32
    %8 = vector.broadcast %cst_4 : f32 to vector<8x128xf32>
    %9 = arith.subf %0, %1 : vector<8x128xf32>
    %10 = arith.mulf %0, %4 : vector<8x128xf32>
    %11 = arith.mulf %1, %7 : vector<8x128xf32>
    %12 = tpu.concatenate %0, %1, %9, %10, %11, %8 in 0 : vector<8x128xf32>, vector<8x128xf32>, vector<8x128xf32>, vector<8x128xf32>, vector<8x128xf32>, vector<8x128xf32> -> vector<48x128xf32>
    %c0_5 = arith.constant 0 : index
    %c0_6 = arith.constant 0 : index
    %13 = vector.load %arg3[%c0_5, %c0_6] : memref<256x48xbf16, #tpu.memory_space<vmem>>, vector<256x48xbf16>
    %14 = arith.truncf %12 : vector<48x128xf32> to vector<48x128xbf16>
    %cst_7 = arith.constant dense<0.000000e+00> : vector<256x128xf32>
    %15 = tpu.matmul %13, %14, %cst_7 {dimension_numbers = #tpu.dot_dimension_numbers<[1], [0], [0], [1], [0, 0, 1, 1], [], []>} : vector<256x48xbf16>, vector<48x128xbf16>, vector<256x128xf32> -> vector<256x128xf32>
    %cst_8 = arith.constant 2.000000e-01 : f32
    %16 = vector.broadcast %cst_8 : f32 to vector<256x128xf32>
    %17 = arith.mulf %16, %15 : vector<256x128xf32>
    %18 = arith.maximumf %15, %17 : vector<256x128xf32>
    %c0_9 = arith.constant 0 : index
    %c0_10 = arith.constant 0 : index
    %19 = vector.load %arg4[%c0_9, %c0_10] : memref<256x256xbf16, #tpu.memory_space<vmem>>, vector<256x256xbf16>
    %20 = arith.truncf %18 : vector<256x128xf32> to vector<256x128xbf16>
    %cst_11 = arith.constant dense<0.000000e+00> : vector<256x128xf32>
    %21 = tpu.matmul %19, %20, %cst_11 {dimension_numbers = #tpu.dot_dimension_numbers<[1], [0], [0], [1], [0, 0, 1, 1], [], []>} : vector<256x256xbf16>, vector<256x128xbf16>, vector<256x128xf32> -> vector<256x128xf32>
    %c0_12 = arith.constant 0 : index
    %c0_13 = arith.constant 0 : index
    %22 = vector.load %arg5[%c0_12, %c0_13] : memref<256x1xf32, #tpu.memory_space<vmem>>, vector<256x1xf32>
    %23 = vector.broadcast %22 : vector<256x1xf32> to vector<256x128xf32>
    %24 = arith.addf %21, %23 : vector<256x128xf32>
    %cst_14 = arith.constant 2.000000e-01 : f32
    %25 = vector.broadcast %cst_14 : f32 to vector<256x128xf32>
    %26 = arith.mulf %25, %24 : vector<256x128xf32>
    %27 = arith.maximumf %24, %26 : vector<256x128xf32>
    %c0_15 = arith.constant 0 : index
    %c0_16 = arith.constant 0 : index
    %28 = vector.load %arg6[%c0_15, %c0_16] : memref<8x256xbf16, #tpu.memory_space<vmem>>, vector<8x256xbf16>
    %29 = arith.truncf %27 : vector<256x128xf32> to vector<256x128xbf16>
    %cst_17 = arith.constant dense<0.000000e+00> : vector<8x128xf32>
    %30 = tpu.matmul %28, %29, %cst_17 {dimension_numbers = #tpu.dot_dimension_numbers<[1], [0], [0], [1], [0, 0, 1, 1], [], []>} : vector<8x256xbf16>, vector<256x128xbf16>, vector<8x128xf32> -> vector<8x128xf32>
    %c0_18 = arith.constant 0 : index
    %c0_19 = arith.constant 0 : index
    %31 = vector.load %arg7[%c0_18, %c0_19] : memref<8x1xf32, #tpu.memory_space<vmem>>, vector<8x1xf32>
    %32 = vector.broadcast %31 : vector<8x1xf32> to vector<8x128xf32>
    %33 = arith.addf %30, %32 : vector<8x128xf32>
    %cst_20 = arith.constant 0.000000e+00 : f32
    %34 = vector.broadcast %cst_20 : f32 to vector<8x128xf32>
    %35 = arith.subf %34, %33 : vector<8x128xf32>
    %36 = math.exp %35 : vector<8x128xf32>
    %cst_21 = arith.constant 1.000000e+00 : f32
    %37 = vector.broadcast %cst_21 : f32 to vector<8x128xf32>
    %38 = arith.addf %37, %36 : vector<8x128xf32>
    %39 = tpu.reciprocal %38 {approx = true} : vector<8x128xf32> -> vector<8x128xf32>
    %c0_22 = arith.constant 0 : index
    %c0_23 = arith.constant 0 : index
    %40 = vector.load %arg8[%c0_22, %c0_23] : memref<8x128xf32, #tpu.memory_space<vmem>>, vector<8x128xf32>
    tpu.vector_store %arg8[%c0_22, %c0_23], %39 {strides = array<i32>} : memref<8x128xf32, #tpu.memory_space<vmem>>, vector<8x128xf32>,
    return
  }
  func.func @transform_0(%arg0: i32) -> (i32, i32) {
    %c0_i32 = arith.constant 0 : i32
    %c0_i32_0 = arith.constant 0 : i32
    return %c0_i32, %arg0 : i32, i32
  }
  func.func @transform_1(%arg0: i32) -> (i32, i32) {
    %c0_i32 = arith.constant 0 : i32
    %c0_i32_0 = arith.constant 0 : i32
    return %c0_i32, %arg0 : i32, i32
  }
  func.func @transform_2(%arg0: i32) -> (i32, i32) {
    %c0_i32 = arith.constant 0 : i32
    %c0_i32_0 = arith.constant 0 : i32
    %c0_i32_1 = arith.constant 0 : i32
    return %c0_i32, %c0_i32_0 : i32, i32
  }
  func.func @transform_3(%arg0: i32) -> (i32, i32) {
    %c0_i32 = arith.constant 0 : i32
    %c0_i32_0 = arith.constant 0 : i32
    %c0_i32_1 = arith.constant 0 : i32
    return %c0_i32, %c0_i32_0 : i32, i32
  }
  func.func @transform_4(%arg0: i32) -> (i32, i32) {
    %c0_i32 = arith.constant 0 : i32
    %c0_i32_0 = arith.constant 0 : i32
    %c0_i32_1 = arith.constant 0 : i32
    return %c0_i32, %c0_i32_0 : i32, i32
  }
  func.func @transform_5(%arg0: i32) -> (i32, i32) {
    %c0_i32 = arith.constant 0 : i32
    %c0_i32_0 = arith.constant 0 : i32
    %c0_i32_1 = arith.constant 0 : i32
    return %c0_i32, %c0_i32_0 : i32, i32
  }
  func.func @transform_6(%arg0: i32) -> (i32, i32) {
    %c0_i32 = arith.constant 0 : i32
    %c0_i32_0 = arith.constant 0 : i32
    %c0_i32_1 = arith.constant 0 : i32
    return %c0_i32, %c0_i32_0 : i32, i32
  }
  func.func @transform_7(%arg0: i32) -> (i32, i32) {
    %c0_i32 = arith.constant 0 : i32
    %c0_i32_0 = arith.constant 0 : i32
    return %c0_i32, %arg0 : i32, i32
  }
}

</mosaic_0001>

<bundles_post_ra>
// kernel: dist2logit_forward.1
= control target key start
LH: loop header
LB: loop body
LE: loop exit
PB: predicated region body
PF: predicated region fallthrough
CT: control target
= control target key end

     0   :  { %vm151_vm0 = vcmask 392192   ;;  %s1904_s0 = inlined_call_operand.vmem [shape: f32[8,128], index: 0, kind: input, shape index: {}]   ;;  %s1905_s1 = inlined_call_operand.vmem [shape: f32[8,128], index: 1, kind: input, shape index: {}]   ;;  %s1906_s2 = inlined_call_operand.vmem [shape: bf16[256,48], index: 2, kind: input, shape index: {}]   ;;  %s1907_s3 = inlined_call_operand.vmem [shape: bf16[256,256], index: 3, kind: input, shape index: {}]   ;;  %s1908_s4 = inlined_call_operand.vmem [shape: f32[256,1], index: 4, kind: input, shape index: {}]   ;;  %s1909_s6 = inlined_call_operand.vmem [shape: f32[8,1], index: 6, kind: input, shape index: {}]   ;;  %s1910_s5 = inlined_call_operand.vmem [shape: bf16[8,256], index: 5, kind: input, shape index: {}]   ;;  %s1911_s7 = inlined_call_operand.vmem [shape: f32[8,128], index: 7, kind: output, shape index: {}]  }
   0x1   :  { %v27_v0 = vld [vmem:[%s1904_s0] sm:$0xff]  ;;  %v1270_v13 = vld [vmem:[%s1906_s2 + $0x8] sm:$0xff]  ;;  %v1271_v14 = vld [vmem:[%s1906_s2 + $0x10] sm:$0xff] }
   0x2   :  { %v28_v1 = vld [vmem:[%s1905_s1] sm:$0xff]  ;;  %v31_v3 = vadd.f32 0.1, %v27_v0  ;;  %v1272_v15 = vld [vmem:[%s1906_s2 + $0x18] sm:$0xff]  ;;  %v1274_v17 = vld [vmem:[%s1906_s2 + $0x28] sm:$0xff] }
   0x3   :  { %v29_v2 = vadd.f32 0.1, %v28_v1  ;;  %v33_v7 = vsub.f32 %v27_v0, %v28_v1  ;;  %v68_v11 = vpack.c.bf16 %v28_v1, %v27_v0  ;;  %v1269_v12 = vld [vmem:[%s1906_s2] sm:$0xff]  ;;  %v1275_v18 = vld [vmem:[%s1906_s2 + $0x30] sm:$0xff]  ;;  %v1276_v19 = vld [vmem:[%s1906_s2 + $0x38] sm:$0xff] }
   0x4   :  { %1340 = vrcp.f32 %v31_v3  ;;  %v1273_v16 = vld [vmem:[%s1906_s2 + $0x20] sm:$0xff]  ;;  %v1283_v20 = vld [vmem:[%s1906_s2 + $0x70] sm:$0xff]  ;;  %v1284_v23 = vld [vmem:[%s1906_s2 + $0x78] sm:$0xff] }
   0x5   :  { %1342 = vrcp.f32 %v29_v2  ;;  %v1277_v21 = vld [vmem:[%s1906_s2 + $0x40] sm:$0xff]  ;;  %v1278_v30 = vld [vmem:[%s1906_s2 + $0x48] sm:$0xff]  ;;  %v1279_v38 = vld [vmem:[%s1906_s2 + $0x50] sm:$0xff] }
   0x6   :  { %v1280_v46 = vld [vmem:[%s1906_s2 + $0x58] sm:$0xff]  ;;  %v1281_v54 = vld [vmem:[%s1906_s2 + $0x60] sm:$0xff]  ;;  %v1282_v57 = vld [vmem:[%s1906_s2 + $0x68] sm:$0xff] }
   0xa   :  { %v1341_v4 = vpop.eup %1340 }
   0xb   :  { %v1343_v5 = vpop.eup %1342  ;;  %v35_v6 = vmul.f32 %v1341_v4, %v28_v1 }
   0xc   :  { %v34_v8 = vmul.f32 %v1343_v5, %v27_v0 }
   0xd   :  { %v70_v9 = vpack.c.bf16 1.0, %v35_v6 }
   0xe   :  { %v69_v10 = vpack.c.bf16 %v34_v8, %v33_v7 }
   0xf   :  { %205 = vmatpush.bf16.msra.mxu0 %v70_v9  ;;  %1317 = vmatpush.bf16.msra.mxu3 %v70_v9 }
  0x13   :  { %206 = vmatpush.bf16.msra.mxu0 %v69_v10  ;;  %1318 = vmatpush.bf16.msra.mxu3 %v69_v10 }
  0x17   :  { %207 = vmatpush.bf16.msra.mxu0 %v68_v11  ;;  %1319 = vmatpush.bf16.msra.mxu3 %v68_v11 }
  0x1a   :  { %1125 = vmatmul.msk.bf16.vlgmr.msra.gmra.mxu0 %vm151_vm0, %v1269_v12  ;;  %1139 = vmatmul.msk.bf16.vlgmr.msra.gmra.mxu3 %vm151_vm0, %v1283_v20 }
  0x2a   :  { %1126 = vmatmul.msk.bf16.gmra.mxu0 %vm151_vm0, %v1270_v13  ;;  %1140 = vmatmul.msk.bf16.gmra.mxu3 %vm151_vm0, %v1284_v23 }
  0x3a   :  { %1127 = vmatmul.msk.bf16.gmra.mxu0 %vm151_vm0, %v1271_v14 }
  0x4a   :  { %1128 = vmatmul.msk.bf16.gmra.mxu0 %vm151_vm0, %v1272_v15 }
  0x5a   :  { %1129 = vmatmul.msk.bf16.gmra.mxu0 %vm151_vm0, %v1273_v16 }
  0x6a   :  { %1130 = vmatmul.msk.bf16.gmra.mxu0 %vm151_vm0, %v1274_v17 }
  0x7a   :  { %1131 = vmatmul.msk.bf16.gmra.mxu0 %vm151_vm0, %v1275_v18 }
  0x8a   :  { %1132 = vmatmul.msk.bf16.gmra.mxu0 %vm151_vm0, %v1276_v19 }
  0x97   :  { %v209_v22 = vpop.f32.mrf.mxu0 }
  0x98   :  { %v289_v24 = vmul.f32 0.2, %v209_v22 }
  0x9a   :  { %1133 = vmatmul.msk.bf16.gmra.mxu0 %vm151_vm0, %v1277_v21  ;;  %v321_v27 = vmax.f32 %v209_v22, %v289_v24 }
  0x9d   :  { %v1465_v3 = vpop.f32.mrf.mxu3 }
  0x9f   :  { %v211_v25 = vpop.f32.mrf.mxu0 }
  0xa0   :  { %v290_v26 = vmul.f32 0.2, %v211_v25 }
  0xa2   :  { %v322_v28 = vmax.f32 %v211_v25, %v290_v26 }
  0xa4   :  { %v1439_v29 = vpack.c.bf16 %v322_v28, %v321_v27 }
  0xa5   :  { %v281_v16 = vpop.f32.mrf.mxu3 }
  0xa7   :  { %v214_v31 = vpop.f32.mrf.mxu0 }
  0xa8   :  { %v291_v32 = vmul.f32 0.2, %v214_v31 }
  0xaa   :  { %1134 = vmatmul.msk.bf16.gmra.mxu0 %vm151_vm0, %v1278_v30  ;;  %v323_v35 = vmax.f32 %v214_v31, %v291_v32 }
  0xad   :  { %v284_v26 = vpop.f32.mrf.mxu3 }
  0xae   :  { %v319_v31 = vmul.f32 0.2, %v284_v26 }
  0xaf   :  { %v216_v33 = vpop.f32.mrf.mxu0 }
  0xb0   :  { %v292_v34 = vmul.f32 0.2, %v216_v33 }
  0xb2   :  { %v324_v36 = vmax.f32 %v216_v33, %v292_v34  ;;  %v317_v34 = vmul.f32 0.2, %v1465_v3 }
  0xb4   :  { %v1445_v37 = vpack.c.bf16 %v324_v36, %v323_v35  ;;  %v318_v35 = vmul.f32 0.2, %v281_v16  ;;  %v351_v36 = vmax.f32 %v284_v26, %v319_v31 }
  0xb5   :  { %v286_v33 = vpop.f32.mrf.mxu3 }
  0xb7   :  { %v219_v39 = vpop.f32.mrf.mxu0 }
  0xb8   :  { %v293_v40 = vmul.f32 0.2, %v219_v39 }
  0xba   :  { %1135 = vmatmul.msk.bf16.gmra.mxu0 %vm151_vm0, %v1279_v38  ;;  %v325_v43 = vmax.f32 %v219_v39, %v293_v40  ;;  %v320_v38 = vmul.f32 0.2, %v286_v33 }
  0xbc   :  { %v352_v39 = vmax.f32 %v286_v33, %v320_v38  ;;  %v431_v38 = vld [vmem:[%s1908_s4 + $0xf0] sm:$0xff] }
  0xbf   :  { %v221_v41 = vpop.f32.mrf.mxu0 }
  0xc0   :  { %v294_v42 = vmul.f32 0.2, %v221_v41 }
  0xc2   :  { %v326_v44 = vmax.f32 %v221_v41, %v294_v42  ;;  %v349_v41 = vmax.f32 %v1465_v3, %v317_v34  ;;  %v350_v42 = vmax.f32 %v281_v16, %v318_v35  ;;  %v1294_v16 = vld [vmem:[%s1907_s3 + $0x44] sm:$0xf0] }
  0xc4   :  { %v1451_v45 = vpack.c.bf16 %v326_v44, %v325_v43  ;;  %v400_v43 = vpack.c.bf16 %v352_v39, %v351_v36  ;;  %v432_v39 = vld [vmem:[%s1908_s4 + $0xf8] sm:$0xff] }
  0xc6   :  { %842 = vmatpush.bf16.msra.mxu2 %v400_v43 }
  0xc7   :  { %v224_v47 = vpop.f32.mrf.mxu0 }
  0xc8   :  { %v295_v48 = vmul.f32 0.2, %v224_v47 }
  0xca   :  { %1136 = vmatmul.msk.bf16.gmra.mxu0 %vm151_vm0, %v1280_v46  ;;  %v327_v51 = vmax.f32 %v224_v47, %v295_v48  ;;  %v1286_v48 = vld [vmem:[%s1907_s3 + $0x4] sm:$0xf0] }
  0xcf   :  { %v226_v49 = vpop.f32.mrf.mxu0 }
  0xd0   :  { %v296_v50 = vmul.f32 0.2, %v226_v49 }
  0xd2   :  { %v328_v52 = vmax.f32 %v226_v49, %v296_v50  ;;  %v399_v50 = vpack.c.bf16 %v350_v42, %v349_v41 }
  0xd4   :  { %v388_v53 = vpack.c.bf16 %v328_v52, %v327_v51  ;;  %843 = vmatpush.bf16.msra.mxu2 %v399_v50 }
  0xd7   :  { %v229_v55 = vpop.f32.mrf.mxu0 }
  0xd8   :  { %v297_v17 = vmul.f32 0.2, %v229_v55 }
  0xda   :  { %1137 = vmatmul.msk.bf16.gmra.mxu0 %vm151_vm0, %v1281_v54  ;;  %v329_v21 = vmax.f32 %v229_v55, %v297_v17  ;;  %v1151_v54 = vld [vmem:[%s1907_s3 + $0x10] sm:$0xf] }
  0xdb   :  { %v415_v55 = vld [vmem:[%s1908_s4 + $0x70] sm:$0xff] }
  0xdf   :  { %v231_v56 = vpop.f32.mrf.mxu0 }
  0xe0   :  { %v298_v13 = vmul.f32 0.2, %v231_v56 }
  0xe2   :  { %v330_v19 = vmax.f32 %v231_v56, %v298_v13  ;;  %v430_v13 = vld [vmem:[%s1908_s4 + $0xe8] sm:$0xff] }
  0xe4   :  { %v389_v25 = vpack.c.bf16 %v330_v19, %v329_v21  ;;  %v407_v21 = vld [vmem:[%s1908_s4 + $0x30] sm:$0xff] }
  0xe7   :  { %v234_v58 = vpop.f32.mrf.mxu0 }
  0xe8   :  { %v299_v10 = vmul.f32 0.2, %v234_v58 }
  0xea   :  { %1138 = vmatmul.msk.bf16.gmra.mxu0 %vm151_vm0, %v1282_v57  ;;  %v331_v18 = vmax.f32 %v234_v58, %v299_v10  ;;  %v1348_v57 = vmov 0  }
  0xeb   :  { %1337 = vset.pattern.permute.xlu0 %v1348_v57  ;;  %1339 = vset.pattern.permute.xlu2 %v1348_v57 }
  0xec   :  { %505 = vperm.xlu0 %1337, %v415_v55   ;;  %1338 = vset.pattern.permute.xlu1 %v1348_v57  ;;  %v1247_v57 = vld [vmem:[%s1907_s3 + $0xd0] sm:$0xf] }
  0xef   :  { %v236_v59 = vpop.f32.mrf.mxu0 }
  0xf0   :  { %v300_v7 = vmul.f32 0.2, %v236_v59 }
  0xf2   :  { %v332_v14 = vmax.f32 %v236_v59, %v300_v7  ;;  %v416_v59 = vld [vmem:[%s1908_s4 + $0x78] sm:$0xff]  ;;  %v411_v7 = vld [vmem:[%s1908_s4 + $0x50] sm:$0xff] }
  0xf3   :  { %485 = vperm.xlu2 %1339, %v411_v7   ;;  %v1161_v7 = vld [vmem:[%s1907_s3 + $0x28] sm:$0xf0] }
  0xf4   :  { %v390_v20 = vpack.c.bf16 %v332_v14, %v331_v18  ;;  %510 = vperm.xlu0 %1337, %v416_v59   ;;  %v401_v59 = vld [vmem:[%s1908_s4] sm:$0xff] }
  0xf7   :  { %v239_v60 = vpop.f32.mrf.mxu0 }
  0xf8   :  { %v301_v4 = vmul.f32 0.2, %v239_v60 }
  0xfa   :  { %v333_v11 = vmax.f32 %v239_v60, %v301_v4  ;;  %v1167_v4 = vld [vmem:[%s1907_s3 + $0x30] sm:$0xf] }
  0xff   :  { %v241_v61 = vpop.f32.mrf.mxu0 }
 0x100   :  { %v302_v1 = vmul.f32 0.2, %v241_v61 }
 0x102   :  { %v334_v8 = vmax.f32 %v241_v61, %v302_v1  ;;  %v1159_v61 = vld [vmem:[%s1907_s3 + $0x20] sm:$0xf] }
 0x104   :  { %v391_v15 = vpack.c.bf16 %v334_v8, %v333_v11  ;;  %v405_v8 = vld [vmem:[%s1908_s4 + $0x20] sm:$0xff]  ;;  %v414_v11 = vld [vmem:[%s1908_s4 + $0x68] sm:$0xff] }
 0x107   :  { %v244_v62 = vpop.f32.mrf.mxu0 }
 0x108   :  { %v303_v63 = vmul.f32 0.2, %v244_v62 }
 0x10a   :  { %v335_v5 = vmax.f32 %v244_v62, %v303_v63  ;;  %v1290_v62 = vld [vmem:[%s1907_s3 + $0x24] sm:$0xf0]  ;;  %v409_v63 = vld [vmem:[%s1908_s4 + $0x40] sm:$0xff] }
 0x10b   :  { %475 = vperm.xlu0 %1337, %v409_v63  }
 0x10f   :  { %v246_v0 = vpop.f32.mrf.mxu0 }
 0x110   :  { %v304_v2 = vmul.f32 0.2, %v246_v0 }
 0x112   :  { %v336_v6 = vmax.f32 %v246_v0, %v304_v2  ;;  %v1160_v0 = vor.u32 %v1290_v62, %v1159_v61  ;;  %v408_v2 = vld [vmem:[%s1908_s4 + $0x38] sm:$0xff]  ;;  %v1287_v61 = vld [vmem:[%s1907_s3 + $0x14] sm:$0xf] }
 0x113   :  { %470 = vperm.xlu0 %1337, %v408_v2   ;;  %v1153_v62 = vld [vmem:[%s1907_s3 + $0x18] sm:$0xf0]  ;;  %v1300_v2 = vld [vmem:[%s1907_s3 + $0x74] sm:$0xf0] }
 0x114   :  { %v392_v9 = vpack.c.bf16 %v336_v6, %v335_v5  ;;  %v1292_v5 = vld [vmem:[%s1907_s3 + $0x34] sm:$0xf0]  ;;  %v413_v6 = vld [vmem:[%s1908_s4 + $0x60] sm:$0xff]  ;;  %v1156_v63 = vor.u32 %v1287_v61, %v1153_v62  ;;  %v1310_v62 = vld [vmem:[%s1907_s3 + $0xc4] sm:$0xf0] }
 0x115   :  { %495 = vperm.xlu1 %1338, %v413_v6   ;;  %v1289_v6 = vld [vmem:[%s1907_s3 + $0x24] sm:$0xf]  ;;  %v1239_v61 = vld [vmem:[%s1907_s3 + $0xc0] sm:$0xf] }
 0x116   :  { %753 = vmatpush.bf16.msra.mxu1 %v392_v9  ;;  %1320 = vmatpush.bf16.msrb.mxu3 %v392_v9  ;;  %v1168_v9 = vor.u32 %v1292_v5, %v1167_v4 }
 0x117   :  { %v249_v12 = vpop.f32.mrf.mxu0 }
 0x118   :  { %v305_v22 = vmul.f32 0.2, %v249_v12 }
 0x11a   :  { %754 = vmatpush.bf16.msra.mxu1 %v391_v15  ;;  %1321 = vmatpush.bf16.msrb.mxu3 %v391_v15  ;;  %v337_v27 = vmax.f32 %v249_v12, %v305_v22  ;;  %v412_v12 = vld [vmem:[%s1908_s4 + $0x58] sm:$0xff]  ;;  %v1175_v15 = vld [vmem:[%s1907_s3 + $0x40] sm:$0xf]  ;;  %v427_v22 = vld [vmem:[%s1908_s4 + $0xd0] sm:$0xff] }
 0x11b   :  { %455 = vperm.xlu0 %1337, %v405_v8   ;;  %490 = vperm.xlu2 %1339, %v412_v12   ;;  %v1164_v8 = vor.u32 %v1289_v6, %v1161_v7  ;;  %v1316_v12 = vld [vmem:[%s1907_s3 + $0xf4] sm:$0xf0] }
 0x11d   :  { %500 = vperm.xlu1 %1338, %v414_v11   ;;  %v1302_v11 = vld [vmem:[%s1907_s3 + $0x84] sm:$0xf0] }
 0x11e   :  { %755 = vmatpush.bf16.msra.mxu1 %v390_v20  ;;  %1322 = vmatpush.bf16.msrb.mxu3 %v390_v20  ;;  %v410_v20 = vld [vmem:[%s1908_s4 + $0x48] sm:$0xff] }
 0x11f   :  { %v251_v23 = vpop.f32.mrf.mxu0 }
 0x120   :  { %v306_v24 = vmul.f32 0.2, %v251_v23 }
 0x122   :  { %v338_v28 = vmax.f32 %v251_v23, %v306_v24  ;;  %756 = vmatpush.bf16.msra.mxu1 %v389_v25  ;;  %1323 = vmatpush.bf16.msrb.mxu3 %v389_v25  ;;  %v1176_v23 = vor.u32 %v1294_v16, %v1175_v15  ;;  %v1291_v15 = vld [vmem:[%s1907_s3 + $0x34] sm:$0xf]  ;;  %v1169_v16 = vld [vmem:[%s1907_s3 + $0x38] sm:$0xf0] }
 0x123   :  { %580 = vperm.xlu0 %1337, %v430_v13   ;;  %465 = vperm.xlu2 %1339, %v407_v21   ;;  %v1249_v21 = vld [vmem:[%s1907_s3 + $0xd8] sm:$0xf0] }
 0x124   :  { %v1467_v30 = vpack.c.bf16 %v338_v28, %v337_v27 }
 0x125   :  { %480 = vperm.xlu1 %1338, %v410_v20   ;;  %v1304_v20 = vld [vmem:[%s1907_s3 + $0x94] sm:$0xf0] }
 0x126   :  { %757 = vmatpush.bf16.msra.mxu1 %v388_v53  ;;  %1324 = vmatpush.bf16.msrb.mxu3 %v388_v53 }
 0x127   :  { %v254_v32 = vpop.f32.mrf.mxu0 }
 0x128   :  { %v307_v40 = vmul.f32 0.2, %v254_v32 }
 0x12a   :  { %758 = vmatpush.bf16.msra.mxu1 %v1451_v45  ;;  %1325 = vmatpush.bf16.msrb.mxu3 %v1451_v45  ;;  %v339_v47 = vmax.f32 %v254_v32, %v307_v40  ;;  %v1143_v45 = vld [vmem:[%s1907_s3] sm:$0xf]  ;;  %v402_v40 = vld [vmem:[%s1908_s4 + $0x8] sm:$0xff] }
 0x12b   :  { %565 = vperm.xlu0 %1337, %v427_v22   ;;  %590 = vperm.xlu2 %1339, %v432_v39   ;;  %v1295_v39 = vld [vmem:[%s1907_s3 + $0x54] sm:$0xf] }
 0x12d   :  { %585 = vperm.xlu1 %1338, %v431_v38  }
 0x12e   :  { %759 = vmatpush.bf16.msra.mxu1 %v1445_v37  ;;  %1326 = vmatpush.bf16.msrb.mxu3 %v1445_v37  ;;  %v1144_v37 = vor.u32 %v1286_v48, %v1143_v45  ;;  %v1296_v45 = vld [vmem:[%s1907_s3 + $0x54] sm:$0xf0] }
 0x12f   :  { %v256_v44 = vpop.f32.mrf.mxu0 }
 0x130   :  { %v308_v46 = vmul.f32 0.2, %v256_v44 }
 0x132   :  { %v340_v49 = vmax.f32 %v256_v44, %v308_v46  ;;  %760 = vmatpush.bf16.msra.mxu1 %v1439_v29  ;;  %1327 = vmatpush.bf16.msrb.mxu3 %v1439_v29  ;;  %v1288_v29 = vld [vmem:[%s1907_s3 + $0x14] sm:$0xf0] }
 0x133   :  { %v1152_v56 = vor.u32 %v1288_v29, %v1151_v54  ;;  %440 = vperm.xlu0 %1337, %v402_v40   ;;  %v404_v54 = vld [vmem:[%s1908_s4 + $0x18] sm:$0xff]  ;;  %v403_v29 = vld [vmem:[%s1908_s4 + $0x10] sm:$0xff] }
 0x134   :  { %v1483_v51 = vpack.c.bf16 %v340_v49, %v339_v47  ;;  %v1183_v47 = vld [vmem:[%s1907_s3 + $0x50] sm:$0xf]  ;;  %v429_v49 = vld [vmem:[%s1908_s4 + $0xe0] sm:$0xff]  ;;  %v1185_v40 = vld [vmem:[%s1907_s3 + $0x58] sm:$0xf0] }
 0x135   :  { %761 = vmatmul.bf16.vlgmr.msra.gmra.mxu1 %v1144_v37  ;;  %v406_v37 = vld [vmem:[%s1908_s4 + $0x28] sm:$0xff]  ;;  %575 = vperm.xlu2 %1339, %v429_v49   ;;  %v1265_v49 = vld [vmem:[%s1907_s3 + $0xf8] sm:$0xf0] }
 0x136   :  { %1328 = vmatpush.bf16.msra.mxu3 %v400_v43  ;;  %460 = vperm.xlu1 %1338, %v406_v37  }
 0x137   :  { %v1485_v52 = vpop.f32.mrf.mxu0 }
 0x138   :  { %v309_v41 = vmul.f32 0.2, %v1485_v52 }
 0x13a   :  { %1329 = vmatpush.bf16.msra.mxu3 %v399_v50  ;;  %v341_v46 = vmax.f32 %v1485_v52, %v309_v41  ;;  %v1184_v50 = vor.u32 %v1296_v45, %v1183_v47  ;;  %v1285_v52 = vld [vmem:[%s1907_s3 + $0x4] sm:$0xf]  ;;  %v1231_v47 = vld [vmem:[%s1907_s3 + $0xb0] sm:$0xf]  ;;  %v1308_v45 = vld [vmem:[%s1907_s3 + $0xb4] sm:$0xf0] }
 0x13d   :  { %450 = vperm.xlu2 %1339, %v404_v54  }
 0x13e   :  { %445 = vperm.xlu1 %1338, %v403_v29   ;;  %v424_v29 = vld [vmem:[%s1908_s4 + $0xb8] sm:$0xff] }
 0x13f   :  { %v1487_v53 = vpop.f32.mrf.mxu0 }
 0x140   :  { %v310_v34 = vmul.f32 0.2, %v1487_v53 }
 0x142   :  { %v342_v43 = vmax.f32 %v1487_v53, %v310_v34  ;;  %v1145_v53 = vld [vmem:[%s1907_s3 + $0x8] sm:$0xf0] }
 0x143   :  { %v1148_v55 = vor.u32 %v1285_v52, %v1145_v53  ;;  %v1257_v34 = vld [vmem:[%s1907_s3 + $0xe8] sm:$0xf0]  ;;  %v1232_v52 = vor.u32 %v1308_v45, %v1231_v47 }
 0x144   :  { %v395_v48 = vpack.c.bf16 %v342_v43, %v341_v46  ;;  %v1188_v43 = vor.u32 %v1295_v39, %v1185_v40  ;;  %v425_v46 = vld [vmem:[%s1908_s4 + $0xc0] sm:$0xff] }
 0x145   :  { %766 = vmatmul.bf16.gmra.mxu1 %v1152_v56  ;;  %v1298_v56 = vld [vmem:[%s1907_s3 + $0x64] sm:$0xf0]  ;;  %435 = vperm.xlu2 %1339, %v401_v59  }
 0x147   :  { %v1498_v58 = vpop.f32.mrf.mxu0 }
 0x148   :  { %v311_v32 = vmul.f32 0.2, %v1498_v58 }
 0x14a   :  { %v343_v42 = vmax.f32 %v1498_v58, %v311_v32  ;;  %v1312_v58 = vld [vmem:[%s1907_s3 + $0xd4] sm:$0xf0] }
 0x14d   :  { %v1684_v32 = vpop.permute.xlu2 %485 }
 0x14f   :  { %v1503_v60 = vpop.f32.mrf.mxu0 }
 0x150   :  { %v312_v27 = vmul.f32 0.2, %v1503_v60 }
 0x152   :  { %v344_v35 = vmax.f32 %v1503_v60, %v312_v27  ;;  %v1223_v27 = vld [vmem:[%s1907_s3 + $0xa0] sm:$0xf] }
 0x154   :  { %v396_v44 = vpack.c.bf16 %v344_v35, %v343_v42  ;;  %v428_v35 = vld [vmem:[%s1908_s4 + $0xd8] sm:$0xff] }
 0x155   :  { %771 = vmatmul.bf16.gmra.mxu1 %v1160_v0  ;;  %v1255_v0 = vld [vmem:[%s1907_s3 + $0xe0] sm:$0xf]  ;;  %570 = vperm.xlu1 %1338, %v428_v35   ;;  %v1303_v35 = vld [vmem:[%s1907_s3 + $0x94] sm:$0xf] }
 0x157   :  { %v269_v1 = vpop.f32.mrf.mxu0 }
 0x158   :  { %v313_v24 = vmul.f32 0.2, %v269_v1 }
 0x15a   :  { %v345_v33 = vmax.f32 %v269_v1, %v313_v24  ;;  %v1199_v1 = vld [vmem:[%s1907_s3 + $0x70] sm:$0xf]  ;;  %v1293_v24 = vld [vmem:[%s1907_s3 + $0x44] sm:$0xf] }
 0x15b   :  { %v1200_v5 = vor.u32 %v1300_v2, %v1199_v1  ;;  %v419_v1 = vld [vmem:[%s1908_s4 + $0x90] sm:$0xff]  ;;  %v422_v2 = vld [vmem:[%s1908_s4 + $0xa8] sm:$0xff] }
 0x15d   :  { %555 = vperm.xlu1 %1338, %v425_v46  }
 0x15f   :  { %v271_v3 = vpop.f32.mrf.mxu0 }
 0x160   :  { %v314_v18 = vmul.f32 0.2, %v271_v3 }
 0x162   :  { %v346_v28 = vmax.f32 %v271_v3, %v314_v18  ;;  %v1314_v3 = vld [vmem:[%s1907_s3 + $0xe4] sm:$0xf0]  ;;  %v1311_v18 = vld [vmem:[%s1907_s3 + $0xd4] sm:$0xf] }
 0x163   :  { %v1256_v4 = vor.u32 %v1314_v3, %v1255_v0  ;;  %v1252_v22 = vor.u32 %v1311_v18, %v1249_v21  ;;  %v1240_v0 = vor.u32 %v1310_v62, %v1239_v61  ;;  %v1225_v61 = vld [vmem:[%s1907_s3 + $0xa8] sm:$0xf0] }
 0x164   :  { %v397_v36 = vpack.c.bf16 %v346_v28, %v345_v33  ;;  %v1313_v28 = vld [vmem:[%s1907_s3 + $0xe4] sm:$0xf]  ;;  %v1306_v33 = vld [vmem:[%s1907_s3 + $0xa4] sm:$0xf0] }
 0x165   :  { %776 = vmatmul.bf16.gmra.mxu1 %v1168_v9  ;;  %v1263_v9 = vld [vmem:[%s1907_s3 + $0xf0] sm:$0xf]  ;;  %v1224_v38 = vor.u32 %v1306_v33, %v1223_v27  ;;  %550 = vperm.xlu1 %1338, %v424_v29   ;;  %v420_v33 = vld [vmem:[%s1908_s4 + $0x98] sm:$0xff] }
 0x166   :  { %v1264_v13 = vor.u32 %v1316_v12, %v1263_v9  ;;  %v418_v9 = vld [vmem:[%s1908_s4 + $0x88] sm:$0xff] }
 0x167   :  { %v274_v10 = vpop.f32.mrf.mxu0 }
 0x168   :  { %v315_v14 = vmul.f32 0.2, %v274_v10 }
 0x16a   :  { %v347_v25 = vmax.f32 %v274_v10, %v315_v14  ;;  %v1207_v10 = vld [vmem:[%s1907_s3 + $0x80] sm:$0xf] }
 0x16b   :  { %v1208_v14 = vor.u32 %v1302_v11, %v1207_v10  ;;  %v417_v10 = vld [vmem:[%s1908_s4 + $0x80] sm:$0xff] }
 0x16d   :  { %525 = vperm.xlu1 %1338, %v419_v1  }
 0x16f   :  { %v276_v17 = vpop.f32.mrf.mxu0 }
 0x170   :  { %v316_v19 = vmul.f32 0.2, %v276_v17 }
 0x172   :  { %v348_v26 = vmax.f32 %v276_v17, %v316_v19  ;;  %v1172_v17 = vor.u32 %v1291_v15, %v1169_v16  ;;  %v1215_v19 = vld [vmem:[%s1907_s3 + $0x90] sm:$0xf]  ;;  %v426_v15 = vld [vmem:[%s1908_s4 + $0xc8] sm:$0xff]  ;;  %v1301_v16 = vld [vmem:[%s1907_s3 + $0x84] sm:$0xf] }
 0x173   :  { %560 = vperm.xlu2 %1339, %v426_v15  }
 0x174   :  { %v398_v31 = vpack.c.bf16 %v348_v26, %v347_v25  ;;  %v1177_v25 = vld [vmem:[%s1907_s3 + $0x48] sm:$0xf0] }
 0x175   :  { %781 = vmatmul.bf16.gmra.mxu1 %v1176_v23  ;;  %v1216_v23 = vor.u32 %v1304_v20, %v1215_v19  ;;  %v1180_v26 = vor.u32 %v1293_v24, %v1177_v25  ;;  %v1703_v42 = vpop.permute.xlu2 %490  ;;  %520 = vperm.xlu1 %1338, %v418_v9   ;;  %v421_v24 = vld [vmem:[%s1908_s4 + $0xa0] sm:$0xff] }
 0x176   :  { %844 = vmatpush.bf16.msra.mxu2 %v398_v31  ;;  %1330 = vmatpush.bf16.msra.mxu3 %v398_v31  ;;  %v1682_v31 = vpop.permute.xlu0 %505 }
 0x17a   :  { %845 = vmatpush.bf16.msra.mxu2 %v397_v36  ;;  %1331 = vmatpush.bf16.msra.mxu3 %v397_v36  ;;  %v1260_v36 = vor.u32 %v1313_v28, %v1257_v34 }
 0x17b   :  { %535 = vperm.xlu2 %1339, %v421_v24  }
 0x17d   :  { %v1725_v54 = vpop.permute.xlu2 %465 }
 0x17e   :  { %846 = vmatpush.bf16.msra.mxu2 %v396_v44  ;;  %1332 = vmatpush.bf16.msra.mxu3 %v396_v44  ;;  %v1701_v41 = vpop.permute.xlu0 %510 }
 0x182   :  { %847 = vmatpush.bf16.msra.mxu2 %v395_v48  ;;  %1333 = vmatpush.bf16.msra.mxu3 %v395_v48  ;;  %v1315_v48 = vld [vmem:[%s1907_s3 + $0xf4] sm:$0xf] }
 0x183   :  { %v1268_v37 = vor.u32 %v1315_v48, %v1265_v49  ;;  %530 = vperm.xlu2 %1339, %v420_v33  }
 0x185   :  { %786 = vmatmul.bf16.gmra.mxu1 %v1184_v50  ;;  %v423_v50 = vld [vmem:[%s1908_s4 + $0xb0] sm:$0xff]  ;;  %v1740_v59 = vpop.permute.xlu2 %590 }
 0x186   :  { %848 = vmatpush.bf16.msra.mxu2 %v1483_v51  ;;  %1334 = vmatpush.bf16.msra.mxu3 %v1483_v51  ;;  %v1191_v51 = vld [vmem:[%s1907_s3 + $0x60] sm:$0xf]  ;;  %v1723_v53 = vpop.permute.xlu0 %475 }
 0x187   :  { %v1192_v60 = vor.u32 %v1298_v56, %v1191_v51  ;;  %545 = vperm.xlu0 %1337, %v423_v50   ;;  %v1297_v51 = vld [vmem:[%s1907_s3 + $0x64] sm:$0xf]  ;;  %v1193_v56 = vld [vmem:[%s1907_s3 + $0x68] sm:$0xf0] }
 0x188   :  { %v1012_v50 = vld [vmem:[%s1909_s6] sm:$0xff] }
 0x18a   :  { %849 = vmatpush.bf16.msra.mxu2 %v1467_v30  ;;  %1335 = vmatpush.bf16.msra.mxu3 %v1467_v30  ;;  %v1248_v30 = vor.u32 %v1312_v58, %v1247_v57  ;;  %v1736_v57 = vpop.permute.xlu1 %495  ;;  %v1196_v58 = vor.u32 %v1297_v51, %v1193_v56 }
 0x18b   :  { %1015 = vperm.xlu2 %1339, %v1012_v50  }
 0x18c   :  { %826 = vmatmul.bf16.vlgmr.msrb.gmra.mxu3 %v1248_v30 }
 0x18d   :  { %850 = vmatmul.bf16.vlgmr.msra.gmra.mxu2 %v1148_v55 }
 0x18e   :  { %v1738_v30 = vpop.permute.xlu0 %470 }
 0x18f   :  { %540 = vperm.xlu0 %1337, %v422_v2   ;;  %v1764_v6 = vpop.permute.xlu2 %575 }
 0x195   :  { %791 = vmatmul.bf16.gmra.mxu1 %v1192_v60 }
 0x196   :  { %v1756_v3 = vpop.permute.xlu0 %455 }
 0x197   :  { %515 = vperm.xlu0 %1337, %v417_v10  }
 0x19c   :  { %831 = vmatmul.bf16.gmra.mxu3 %v1256_v4  ;;  %v1299_v4 = vld [vmem:[%s1907_s3 + $0x74] sm:$0xf] }
 0x19d   :  { %855 = vmatmul.bf16.gmra.mxu2 %v1156_v63  ;;  %v1748_v63 = vpop.permute.xlu1 %500 }
 0x19e   :  { %v1774_v12 = vpop.permute.xlu0 %580 }
 0x1a5   :  { %796 = vmatmul.bf16.gmra.mxu1 %v1200_v5  ;;  %v1201_v5 = vld [vmem:[%s1907_s3 + $0x78] sm:$0xf0]  ;;  %v1772_v11 = vpop.permute.xlu1 %480 }
 0x1a6   :  { %v1787_v20 = vpop.permute.xlu0 %565 }
 0x1ac   :  { %836 = vmatmul.bf16.gmra.mxu3 %v1264_v13  ;;  %v451_v13 = vpop.permute.xlu2 %450 }
 0x1ad   :  { %860 = vmatmul.bf16.gmra.mxu2 %v1164_v8  ;;  %v1204_v8 = vor.u32 %v1299_v4, %v1201_v5  ;;  %v1785_v18 = vpop.permute.xlu1 %585 }
 0x1ae   :  { %v441_v28 = vpop.permute.xlu0 %440 }
 0x1b2   :  { %v762_v44 = vpop.f32.mrf.mxu1 }
 0x1b4   :  { %v436_v21 = vpop.permute.xlu2 %435 }
 0x1b5   :  { %801 = vmatmul.bf16.gmra.mxu1 %v1208_v14 }
 0x1ba   :  { %v764_v55 = vpop.f32.mrf.mxu1 }
 0x1bc   :  { %915 = vmatmul.bf16.vlgmr.msra.gmra.mxu3 %v1252_v22 }
 0x1bd   :  { %865 = vmatmul.bf16.gmra.mxu2 %v1172_v17  ;;  %v1209_v17 = vld [vmem:[%s1907_s3 + $0x88] sm:$0xf0] }
 0x1be   :  { %v1212_v19 = vor.u32 %v1301_v16, %v1209_v17 }
 0x1c2   :  { %v767_v60 = vpop.f32.mrf.mxu1 }
 0x1c5   :  { %806 = vmatmul.bf16.gmra.mxu1 %v1216_v23  ;;  %v763_v23 = vadd.f32 %v762_v44, %v436_v21 }
 0x1ca   :  { %v769_v7 = vpop.f32.mrf.mxu1 }
 0x1cc   :  { %920 = vmatmul.bf16.gmra.mxu3 %v1260_v36  ;;  %v1217_v36 = vld [vmem:[%s1907_s3 + $0x98] sm:$0xf0] }
 0x1cd   :  { %870 = vmatmul.bf16.gmra.mxu2 %v1180_v26  ;;  %v461_v26 = vpop.permute.xlu1 %460  ;;  %v1220_v44 = vor.u32 %v1303_v35, %v1217_v36 }
 0x1d2   :  { %v772_v14 = vpop.f32.mrf.mxu1 }
 0x1d3   :  { %v773_v9 = vadd.f32 %v772_v14, %v1756_v3 }
 0x1d5   :  { %811 = vmatmul.bf16.gmra.mxu1 %v1224_v38  ;;  %v765_v38 = vadd.f32 %v764_v55, %v441_v28  ;;  %v446_v46 = vpop.permute.xlu1 %445 }
 0x1da   :  { %v774_v22 = vpop.f32.mrf.mxu1 }
 0x1db   :  { %v775_v24 = vadd.f32 %v774_v22, %v461_v26  ;;  %v1309_v22 = vld [vmem:[%s1907_s3 + $0xc4] sm:$0xf]  ;;  %v1241_v26 = vld [vmem:[%s1907_s3 + $0xc8] sm:$0xf0] }
 0x1dc   :  { %925 = vmatmul.bf16.gmra.mxu3 %v1268_v37  ;;  %v768_v37 = vadd.f32 %v767_v60, %v446_v46  ;;  %v770_v60 = vadd.f32 %v769_v7, %v451_v13  ;;  %v1307_v7 = vld [vmem:[%s1907_s3 + $0xb4] sm:$0xf]  ;;  %v1233_v13 = vld [vmem:[%s1907_s3 + $0xb8] sm:$0xf0] }
 0x1dd   :  { %875 = vmatmul.bf16.gmra.mxu2 %v1188_v43 }
 0x1e2   :  { %v777_v34 = vpop.f32.mrf.mxu1 }
 0x1e3   :  { %v778_v35 = vadd.f32 %v777_v34, %v1725_v54 }
 0x1e5   :  { %816 = vmatmul.bf16.gmra.mxu1 %v1232_v52 }
 0x1ea   :  { %v779_v29 = vpop.f32.mrf.mxu1 }
 0x1eb   :  { %v780_v54 = vadd.f32 %v779_v29, %v1738_v30 }
 0x1ed   :  { %880 = vmatmul.bf16.gmra.mxu2 %v1196_v58  ;;  %v1305_v58 = vld [vmem:[%s1907_s3 + $0xa4] sm:$0xf] }
 0x1ee   :  { %v1228_v2 = vor.u32 %v1305_v58, %v1225_v61 }
 0x1f2   :  { %v782_v4 = vpop.f32.mrf.mxu1 }
 0x1f3   :  { %v783_v58 = vadd.f32 %v782_v4, %v1723_v53 }
 0x1f5   :  { %821 = vmatmul.bf16.gmra.mxu1 %v1240_v0 }
 0x1fa   :  { %v1815_v21 = vpop.f32.mrf.mxu1 }
 0x1fd   :  { %885 = vmatmul.bf16.gmra.mxu2 %v1204_v8 }
 0x20d   :  { %890 = vmatmul.bf16.gmra.mxu2 %v1212_v19 }
 0x20f   :  { %v827_v45 = vpop.f32.mrf.mxu3 }
 0x210   :  { %v851_v25 = vpop.f32.mrf.mxu2 }
 0x211   :  { %v852_v27 = vadd.f32 %v851_v25, %v763_v23 }
 0x213   :  { %v931_v40 = vmul.f32 0.2, %v852_v27 }
 0x215   :  { %v963_v48 = vmax.f32 %v852_v27, %v931_v40  ;;  %v1236_v27 = vor.u32 %v1307_v7, %v1233_v13 }
 0x217   :  { %v829_v56 = vpop.f32.mrf.mxu3 }
 0x218   :  { %v853_v39 = vpop.f32.mrf.mxu2 }
 0x219   :  { %v854_v43 = vadd.f32 %v853_v39, %v765_v38  ;;  %v1826_v39 = vpop.f32.mrf.mxu1 }
 0x21b   :  { %v932_v47 = vmul.f32 0.2, %v854_v43 }
 0x21d   :  { %v964_v49 = vmax.f32 %v854_v43, %v932_v47  ;;  %895 = vmatmul.bf16.gmra.mxu2 %v1220_v44 }
 0x21f   :  { %v1804_v52 = vpack.c.bf16 %v964_v49, %v963_v48  ;;  %v832_v8 = vpop.f32.mrf.mxu3 }
 0x220   :  { %v856_v55 = vpop.f32.mrf.mxu2  ;;  %v833_v4 = vadd.f32 %v832_v8, %v1764_v6  ;;  %v1853_v8 = vpop.permute.xlu0 %545 }
 0x221   :  { %v857_v51 = vadd.f32 %v856_v55, %v768_v37  ;;  %v789_v34 = vpop.f32.mrf.mxu1  ;;  %v1244_v37 = vor.u32 %v1309_v22, %v1241_v26  ;;  %v828_v55 = vadd.f32 %v827_v45, %v1787_v20 }
 0x223   :  { %v933_v0 = vmul.f32 0.2, %v857_v51 }
 0x225   :  { %v965_v10 = vmax.f32 %v857_v51, %v933_v0 }
 0x227   :  { %v834_v23 = vpop.f32.mrf.mxu3 }
 0x228   :  { %v858_v62 = vpop.f32.mrf.mxu2 }
 0x229   :  { %v859_v1 = vadd.f32 %v858_v62, %v770_v60 }
 0x22b   :  { %v934_v5 = vmul.f32 0.2, %v859_v1 }
 0x22d   :  { %v966_v15 = vmax.f32 %v859_v1, %v934_v5  ;;  %900 = vmatmul.bf16.gmra.mxu2 %v1228_v2  ;;  %v571_v2 = vpop.permute.xlu1 %570  ;;  %v792_v5 = vpop.f32.mrf.mxu1 }
 0x22e   :  { %v830_v29 = vadd.f32 %v829_v56, %v571_v2 }
 0x22f   :  { %v1813_v16 = vpack.c.bf16 %v966_v15, %v965_v10  ;;  %v1823_v33 = vpop.f32.mrf.mxu3 }
 0x230   :  { %v861_v17 = vpop.f32.mrf.mxu2 }
 0x231   :  { %v862_v19 = vadd.f32 %v861_v17, %v773_v9 }
 0x233   :  { %v935_v14 = vmul.f32 0.2, %v862_v19 }
 0x235   :  { %v967_v36 = vmax.f32 %v862_v19, %v935_v14  ;;  %v794_v53 = vpop.f32.mrf.mxu1  ;;  %v835_v14 = vadd.f32 %v834_v23, %v1774_v12  ;;  %v1851_v6 = vpop.permute.xlu1 %555 }
 0x236   :  { %v1857_v23 = vpop.permute.xlu0 %540 }
 0x237   :  { %v1830_v46 = vpop.f32.mrf.mxu3 }
 0x238   :  { %v863_v3 = vpop.f32.mrf.mxu2 }
 0x239   :  { %v864_v25 = vadd.f32 %v863_v3, %v775_v24 }
 0x23b   :  { %v936_v28 = vmul.f32 0.2, %v864_v25 }
 0x23d   :  { %v968_v38 = vmax.f32 %v864_v25, %v936_v28  ;;  %905 = vmatmul.bf16.gmra.mxu2 %v1236_v27  ;;  %v797_v28 = vpop.f32.mrf.mxu1 }
 0x23f   :  { %v1828_v40 = vpack.c.bf16 %v968_v38, %v967_v36  ;;  %v916_v51 = vpop.f32.mrf.mxu3 }
 0x240   :  { %v866_v43 = vpop.f32.mrf.mxu2  ;;  %v917_v1 = vadd.f32 %v916_v51, %v828_v55  ;;  %v795_v55 = vadd.f32 %v794_v53, %v1748_v63  ;;  %v785_v63 = vadd.f32 %v1815_v21, %v1772_v11 }
 0x241   :  { %v867_v44 = vadd.f32 %v866_v43, %v778_v35 }
 0x242   :  { %v957_v9 = vmul.f32 0.2, %v917_v1 }
 0x243   :  { %v937_v48 = vmul.f32 0.2, %v867_v44 }
 0x244   :  { %v989_v45 = vmax.f32 %v917_v1, %v957_v9  ;;  %v790_v1 = vadd.f32 %v789_v34, %v1703_v42 }
 0x245   :  { %v969_v61 = vmax.f32 %v867_v44, %v937_v48  ;;  %v799_v22 = vpop.f32.mrf.mxu1  ;;  %v1855_v48 = vpop.permute.xlu1 %550 }
 0x247   :  { %v918_v10 = vpop.f32.mrf.mxu3 }
 0x248   :  { %v868_v47 = vpop.f32.mrf.mxu2  ;;  %v919_v15 = vadd.f32 %v918_v10, %v830_v29 }
 0x249   :  { %v869_v49 = vadd.f32 %v868_v47, %v780_v54 }
 0x24a   :  { %v958_v17 = vmul.f32 0.2, %v919_v15 }
 0x24b   :  { %v938_v50 = vmul.f32 0.2, %v869_v49 }
 0x24c   :  { %v990_v19 = vmax.f32 %v919_v15, %v958_v17 }
 0x24d   :  { %v970_v60 = vmax.f32 %v869_v49, %v938_v50  ;;  %910 = vmatmul.bf16.gmra.mxu2 %v1244_v37  ;;  %v802_v47 = vpop.f32.mrf.mxu1  ;;  %v798_v49 = vadd.f32 %v797_v28, %v1682_v31  ;;  %v793_v50 = vadd.f32 %v792_v5, %v1736_v57  ;;  %v526_v10 = vpop.permute.xlu1 %525 }
 0x24e   :  { %v1846_v13 = vpack.c.bf16 %v990_v19, %v989_v45  ;;  %v516_v31 = vpop.permute.xlu0 %515 }
 0x24f   :  { %v1841_v62 = vpack.c.bf16 %v970_v60, %v969_v61  ;;  %v921_v7 = vpop.f32.mrf.mxu3  ;;  %v788_v60 = vadd.f32 %v1826_v39, %v1684_v32  ;;  %v803_v53 = vadd.f32 %v802_v47, %v516_v31 }
 0x250   :  { %v871_v0 = vpop.f32.mrf.mxu2  ;;  %v922_v3 = vadd.f32 %v921_v7, %v833_v4 }
 0x251   :  { %v1843_v30 = vadd.f32 %v871_v0, %v783_v58  ;;  %v800_v58 = vadd.f32 %v799_v22, %v1701_v41 }
 0x252   :  { %v959_v25 = vmul.f32 0.2, %v922_v3 }
 0x253   :  { %v939_v21 = vmul.f32 0.2, %v1843_v30 }
 0x254   :  { %v991_v38 = vmax.f32 %v922_v3, %v959_v25 }
 0x255   :  { %v804_v37 = vpop.f32.mrf.mxu1  ;;  %v521_v11 = vpop.permute.xlu1 %520 }
 0x257   :  { %v923_v56 = vpop.f32.mrf.mxu3 }
 0x258   :  { %v873_v20 = vpop.f32.mrf.mxu2  ;;  %v924_v27 = vadd.f32 %v923_v56, %v835_v14 }
 0x259   :  { %v874_v39 = vadd.f32 %v873_v20, %v785_v63 }
 0x25a   :  { %v960_v35 = vmul.f32 0.2, %v924_v27 }
 0x25b   :  { %v940_v56 = vmul.f32 0.2, %v874_v39 }
 0x25c   :  { %v992_v43 = vmax.f32 %v924_v27, %v960_v35 }
 0x25d   :  { %v807_v32 = vpop.f32.mrf.mxu1 }
 0x25e   :  { %v1849_v44 = vpack.c.bf16 %v992_v43, %v991_v38  ;;  %v805_v38 = vadd.f32 %v804_v37, %v521_v11 }
 0x25f   :  { %v926_v28 = vpop.f32.mrf.mxu3 }
 0x260   :  { %v876_v24 = vpop.f32.mrf.mxu2 }
 0x261   :  { %v877_v5 = vadd.f32 %v876_v24, %v788_v60 }
 0x263   :  { %v941_v3 = vmul.f32 0.2, %v877_v5 }
 0x265   :  { %v973_v24 = vmax.f32 %v877_v5, %v941_v3  ;;  %v1869_v43 = vpop.f32.mrf.mxu1 }
 0x268   :  { %v878_v36 = vpop.f32.mrf.mxu2 }
 0x269   :  { %v879_v15 = vadd.f32 %v878_v36, %v790_v1  ;;  %v972_v36 = vmax.f32 %v874_v39, %v940_v56 }
 0x26b   :  { %v942_v4 = vmul.f32 0.2, %v879_v15 }
 0x26d   :  { %v974_v27 = vmax.f32 %v879_v15, %v942_v4 }
 0x26f   :  { %v1001_v20 = vpack.c.bf16 %v974_v27, %v973_v24 }
 0x270   :  { %v881_v26 = vpop.f32.mrf.mxu2 }
 0x271   :  { %v882_v2 = vadd.f32 %v881_v26, %v793_v50  ;;  %v971_v26 = vmax.f32 %v1843_v30, %v939_v21  ;;  %v838_v50 = vadd.f32 %v1823_v33, %v1785_v18 }
 0x273   :  { %v943_v41 = vmul.f32 0.2, %v882_v2 }
 0x275   :  { %v975_v14 = vmax.f32 %v882_v2, %v943_v41 }
 0x278   :  { %v883_v54 = vpop.f32.mrf.mxu2 }
 0x279   :  { %v884_v61 = vadd.f32 %v883_v54, %v795_v55  ;;  %v840_v55 = vadd.f32 %v1830_v46, %v1740_v59  ;;  %v1885_v59 = vld [vmem:[%s1910_s5] sm:$0xff] }
 0x27a   :  { %v1019_v31 = vunpack.c.l.b16 %v1885_v59 }
 0x27b   :  { %v944_v17 = vmul.f32 0.2, %v884_v61 }
 0x27d   :  { %v976_v42 = vmax.f32 %v884_v61, %v944_v17  ;;  %v808_v61 = vadd.f32 %v807_v32, %v526_v10 }
 0x27f   :  { %v1002_v35 = vpack.c.bf16 %v976_v42, %v975_v14 }
 0x280   :  { %v886_v12 = vpop.f32.mrf.mxu2 }
 0x281   :  { %v887_v51 = vadd.f32 %v886_v12, %v798_v49  ;;  %v1000_v49 = vpack.c.bf16 %v972_v36, %v971_v26 }
 0x283   :  { %v945_v29 = vmul.f32 0.2, %v887_v51 }
 0x285   :  { %v977_v45 = vmax.f32 %v887_v51, %v945_v29  ;;  %v812_v29 = vpop.f32.mrf.mxu1 }
 0x288   :  { %v888_v0 = vpop.f32.mrf.mxu2 }
 0x289   :  { %v889_v9 = vadd.f32 %v888_v0, %v800_v58  ;;  %v928_v58 = vpop.f32.mrf.mxu3  ;;  %v927_v0 = vadd.f32 %v926_v28, %v838_v50 }
 0x28a   :  { %v929_v30 = vadd.f32 %v928_v58, %v840_v55 }
 0x28b   :  { %v946_v57 = vmul.f32 0.2, %v889_v9 }
 0x28c   :  { %v962_v18 = vmul.f32 0.2, %v929_v30 }
 0x28d   :  { %v978_v19 = vmax.f32 %v889_v9, %v946_v57  ;;  %v961_v9 = vmul.f32 0.2, %v927_v0  ;;  %v814_v15 = vpop.f32.mrf.mxu1 }
 0x28e   :  { %v994_v46 = vmax.f32 %v929_v30, %v962_v18 }
 0x28f   :  { %v1003_v34 = vpack.c.bf16 %v978_v19, %v977_v45  ;;  %v993_v33 = vmax.f32 %v927_v0, %v961_v9  ;;  %v561_v45 = vpop.permute.xlu2 %560 }
 0x290   :  { %v891_v7 = vpop.f32.mrf.mxu2 }
 0x291   :  { %v892_v25 = vadd.f32 %v891_v7, %v803_v53  ;;  %1025 = vmatpush.bf16.msrb.mxu3 %v1003_v34  ;;  %v1011_v17 = vpack.c.bf16 %v994_v46, %v993_v33 }
 0x293   :  { %v947_v54 = vmul.f32 0.2, %v892_v25 }
 0x295   :  { %1026 = vmatpush.bf16.msrb.mxu3 %v1002_v35  ;;  %v979_v51 = vmax.f32 %v892_v25, %v947_v54 }
 0x297   :  { %v536_v32 = vpop.permute.xlu2 %535 }
 0x298   :  { %v893_v22 = vpop.f32.mrf.mxu2  ;;  %v813_v27 = vadd.f32 %v812_v29, %v536_v32 }
 0x299   :  { %v894_v47 = vadd.f32 %v893_v22, %v805_v38  ;;  %1027 = vmatpush.bf16.msrb.mxu3 %v1001_v20 }
 0x29b   :  { %v948_v12 = vmul.f32 0.2, %v894_v47 }
 0x29d   :  { %v980_v37 = vmax.f32 %v894_v47, %v948_v12  ;;  %1028 = vmatpush.bf16.msrb.mxu3 %v1000_v49 }
 0x29f   :  { %v1876_v60 = vpack.c.bf16 %v980_v37, %v979_v51  ;;  %v531_v28 = vpop.permute.xlu2 %530 }
 0x2a0   :  { %v896_v1 = vpop.f32.mrf.mxu2 }
 0x2a1   :  { %v1878_v2 = vadd.f32 %v896_v1, %v808_v61  ;;  %1029 = vmatpush.bf16.msrb.mxu3 %v1841_v62  ;;  %v1021_v62 = vpack.c.b16 %v1019_v31, %v1019_v31  ;;  %v1020_v61 = vunpack.c.h.b16 %v1885_v59 }
 0x2a3   :  { %v949_v50 = vmul.f32 0.2, %v1878_v2  ;;  %v1022_v0 = vpack.c.b16 %v1020_v61, %v1020_v61 }
 0x2a5   :  { %1030 = vmatpush.bf16.msrb.mxu3 %v1828_v40  ;;  %v817_v40 = vpop.f32.mrf.mxu1  ;;  %v981_v58 = vmax.f32 %v1878_v2, %v949_v50 }
 0x2a6   :  { %v818_v34 = vadd.f32 %v817_v40, %v1853_v8 }
 0x2a7   :  { %v1016_v29 = vpop.permute.xlu2 %1015 }
 0x2a8   :  { %v898_v10 = vpop.f32.mrf.mxu2 }
 0x2a9   :  { %1031 = vmatpush.bf16.msrb.mxu3 %v1813_v16 }
 0x2ad   :  { %1032 = vmatpush.bf16.msrb.mxu3 %v1804_v52  ;;  %v819_v5 = vpop.f32.mrf.mxu1 }
 0x2ae   :  { %v820_v52 = vadd.f32 %v819_v5, %v1855_v48 }
 0x2b0   :  { %v901_v57 = vpop.f32.mrf.mxu2  ;;  %1033 = vmatmul.bf16.vlgmr.msrb.gmra.mxu3 %v1021_v62 }
 0x2b1   :  { %1038 = vmatpush.bf16.msra.mxu3 %v1011_v17  ;;  %v902_v24 = vadd.f32 %v901_v57, %v813_v27 }
 0x2b3   :  { %v951_v54 = vmul.f32 0.2, %v902_v24 }
 0x2b5   :  { %1039 = vmatpush.bf16.msra.mxu3 %v1849_v44  ;;  %v822_v53 = vpop.f32.mrf.mxu1  ;;  %v983_v55 = vmax.f32 %v902_v24, %v951_v54 }
 0x2b6   :  { %v823_v39 = vadd.f32 %v822_v53, %v1851_v6  ;;  %v810_v6 = vadd.f32 %v1869_v43, %v531_v28 }
 0x2b8   :  { %v903_v63 = vpop.f32.mrf.mxu2  ;;  %v899_v8 = vadd.f32 %v898_v10, %v810_v6 }
 0x2b9   :  { %1040 = vmatpush.bf16.msra.mxu3 %v1846_v13  ;;  %v815_v13 = vadd.f32 %v814_v15, %v1857_v23 }
 0x2ba   :  { %v950_v47 = vmul.f32 0.2, %v899_v8 }
 0x2bb   :  { %v904_v35 = vadd.f32 %v903_v63, %v815_v13 }
 0x2bc   :  { %v982_v51 = vmax.f32 %v899_v8, %v950_v47 }
 0x2bd   :  { %v824_v4 = vpop.f32.mrf.mxu1  ;;  %v952_v20 = vmul.f32 0.2, %v904_v35 }
 0x2be   :  { %v825_v44 = vadd.f32 %v824_v4, %v561_v45  ;;  %v1005_v37 = vpack.c.bf16 %v982_v51, %v981_v58 }
 0x2bf   :  { %v984_v12 = vmax.f32 %v904_v35, %v952_v20 }
 0x2c0   :  { %v906_v41 = vpop.f32.mrf.mxu2 }
 0x2c1   :  { %v907_v14 = vadd.f32 %v906_v41, %v818_v34  ;;  %v1006_v43 = vpack.c.bf16 %v984_v12, %v983_v55 }
 0x2c3   :  { %v953_v48 = vmul.f32 0.2, %v907_v14 }
 0x2c5   :  { %v985_v23 = vmax.f32 %v907_v14, %v953_v48 }
 0x2c8   :  { %v908_v19 = vpop.f32.mrf.mxu2 }
 0x2c9   :  { %v909_v7 = vadd.f32 %v908_v19, %v820_v52 }
 0x2cb   :  { %v954_v11 = vmul.f32 0.2, %v909_v7 }
 0x2cd   :  { %v986_v22 = vmax.f32 %v909_v7, %v954_v11 }
 0x2cf   :  { %v1007_v49 = vpack.c.bf16 %v986_v22, %v985_v23 }
 0x2d0   :  { %v911_v16 = vpop.f32.mrf.mxu2 }
 0x2d1   :  { %v912_v42 = vadd.f32 %v911_v16, %v823_v39 }
 0x2d3   :  { %v955_v25 = vmul.f32 0.2, %v912_v42 }
 0x2d5   :  { %v987_v36 = vmax.f32 %v912_v42, %v955_v25 }
 0x2d8   :  { %v913_v3 = vpop.f32.mrf.mxu2 }
 0x2d9   :  { %v914_v56 = vadd.f32 %v913_v3, %v825_v44 }
 0x2db   :  { %v956_v21 = vmul.f32 0.2, %v914_v56 }
 0x2dd   :  { %v988_v38 = vmax.f32 %v914_v56, %v956_v21 }
 0x2df   :  { %v1008_v26 = vpack.c.bf16 %v988_v38, %v987_v36 }
 0x2e1   :  { %1041 = vmatpush.bf16.msra.mxu3 %v1008_v26 }
 0x2e5   :  { %1042 = vmatpush.bf16.msra.mxu3 %v1007_v49 }
 0x2e9   :  { %1043 = vmatpush.bf16.msra.mxu3 %v1006_v43 }
 0x2ed   :  { %1044 = vmatpush.bf16.msra.mxu3 %v1005_v37 }
 0x2f1   :  { %1045 = vmatpush.bf16.msra.mxu3 %v1876_v60 }
 0x2f4   :  { %1046 = vmatmul.bf16.vlgmr.msra.gmra.mxu3 %v1022_v0 }
 0x333   :  { %v1034_v30 = vpop.f32.mrf.mxu3 }
 0x334   :  { %v1035_v9 = vadd.f32 %v1034_v30, %v1016_v29 }
 0x33b   :  { %v1036_v1 = vpop.f32.mrf.mxu3 }
 0x377   :  { %v1047_v18 = vpop.f32.mrf.mxu3 }
 0x378   :  { %v1048_v33 = vadd.f32 %v1047_v18, %v1035_v9 }
 0x37a   :  { %v1051_v46 = vsub.f32 0.0, %v1048_v33 }
 0x37c   :  { %v1052_v10 = vmul.f32 1.442695, %v1051_v46 }
 0x37e   :  { %1344 = vpow2.f32 %v1052_v10 }
 0x37f   :  { %v1049_v31 = vpop.f32.mrf.mxu3 }
 0x384   :  { %v1345_v2 = vpop.eup %1344 }
 0x385   :  { %v1054_v15 = vadd.f32 1.0, %v1345_v2 }
 0x387   :  { %1346 = vrcp.f32 %v1054_v15 }
 0x38d   :  { %v1347_v17 = vpop.eup %1346 }
 0x38e   :  { %1056 = vst [vmem:[%s1911_s7] sm:$0xff] %v1347_v17 }

</bundles_post_ra>
